<compile_context>
chip_gen: v7x
topology: tpu7x:2x2x1
jax: 0.10.0
libtpu: 0.0.40
codegen_flags: <defaults>
</compile_context>

<pallas_src>
import functools

import jax
import jax.numpy as jnp
from jax.experimental import pallas as pl
from jax.experimental.pallas import tpu as pltpu

_LANE = 128


def _norm_kernel(x_ref, w_ref, b_ref, o_ref, *, eps: float, inv_size: float,
                 pad_cols: int):
    # x_ref: (TILE_ROWS, SIZE_PADDED) tile of the (possibly low-precision) input.
    # w_ref/b_ref: (1, SIZE_PADDED) parameters (zero in padded lanes).
    # NOTE: x_ref is re-read/re-cast in each pass so Mosaic does not have to
    # keep a full f32 copy of the tile live across the reductions.

    # Pass 1: mean over the real columns (padded lanes are exact zeros, so the
    # full-width sum already equals the real-column sum).
    xf = x_ref[...].astype(jnp.float32)                 # x = x.float()
    mean = jnp.sum(xf, axis=-1, keepdims=True) * inv_size

    # Pass 2: centered sum of squares (PyTorch two-pass formulation).
    centered = x_ref[...].astype(jnp.float32) - mean
    ss = jnp.sum(centered * centered, axis=-1, keepdims=True)
    if pad_cols:
        # Padded lanes hold 0 -> centered == -mean there; remove their exact
        # contribution (pad_cols * mean^2) instead of building a lane mask.
        ss = jnp.maximum(ss - float(pad_cols) * mean * mean, 0.0)
    inv = jax.lax.rsqrt(ss * inv_size + eps)            # EUP rsqrt, no VALU divide

    # Pass 3: normalize + affine; padded lanes get w=b=0 and are sliced off
    # by the wrapper.
    w = w_ref[...].astype(jnp.float32)
    b = b_ref[...].astype(jnp.float32)
    out = (x_ref[...].astype(jnp.float32) - mean) * inv * w + b
    o_ref[...] = out.astype(o_ref.dtype)                # ret.to(orig_dtype)


def _target_block_bytes() -> int:
    """Generation-specific input-block size target."""
    try:
        kind = jax.devices()[0].device_kind.lower()
    except Exception:  # pragma: no cover - defensive
        return 2 << 20
    if "v5 lite" in kind or "v5e" in kind or "v5lite" in kind:
        return 1 << 20      # v5e: stay well inside the 16 MiB default scoped VMEM
    if "v7" in kind:
        return 4 << 20      # v7x: ~3.2 TB/s HBM, amortize the per-step overhead
    return 2 << 20          # v6e / others


def _choose_tile_rows(rows: int, row_bytes: int, target_block_bytes: int,
                      min_steps: int = 8) -> int:
    """Sublane-aligned row tile sized for ~target_block_bytes of input."""
    tr = max(target_block_bytes // max(row_bytes, 1), 8)
    tr = max((tr // 8) * 8, 8)                          # multiple of 8 rows
    # Guarantee >= min_steps grid steps when rows allow it, so each v7x
    # TensorCore gets several blocks and the DMA pipeline stays overlapped.
    if rows >= min_steps * 8:
        per_step = (rows + min_steps - 1) // min_steps
        per_step = ((per_step + 7) // 8) * 8
        tr = min(tr, per_step)
    rows_padded = ((rows + 7) // 8) * 8
    return min(tr, rows_padded)


def norm_forward(x, weight, bias, *, eps: float = 1e-5,
                 tile_rows: int | None = None):
    """Pallas implementation of Norm.forward. Normalizes over the last axis."""
    orig_shape = x.shape
    orig_dtype = x.dtype
    size = orig_shape[-1]
    assert weight.shape == (size,) and bias.shape == (size,)

    # Flatten all leading dims into rows.
    rows = 1
    for d in orig_shape[:-1]:
        rows *= d
    x2d = x.reshape(rows, size)

    # Pad hidden to a multiple of 128 so vector ops / stores are lane-dense.
    size_padded = ((size + _LANE - 1) // _LANE) * _LANE
    pad_cols = size_padded - size
    if pad_cols:
        x2d = jnp.pad(x2d, ((0, 0), (0, pad_cols)))
        w1d = jnp.pad(weight, (0, pad_cols))
        b1d = jnp.pad(bias, (0, pad_cols))
    else:
        w1d, b1d = weight, bias
    w2d = w1d.reshape(1, size_padded)
    b2d = b1d.reshape(1, size_padded)

    itemsize = jnp.dtype(orig_dtype).itemsize
    if tile_rows is None:
        tile_rows = _choose_tile_rows(rows, size_padded * itemsize,
                                      _target_block_bytes())

    grid = (pl.cdiv(rows, tile_rows),)

    # Explicit scoped-VMEM budget: double-buffered in + out blocks, a couple of
    # f32-sized temporaries, the (tiny) parameter blocks, plus headroom.
    block_io_bytes = tile_rows * size_padded * itemsize
    f32_block_bytes = tile_rows * size_padded * 4
    param_bytes = 2 * 2 * size_padded * 4
    vmem_needed = (4 * block_io_bytes + 2 * f32_block_bytes + param_bytes
                   + (4 << 20))
    vmem_limit = int(min(max(vmem_needed, 16 << 20), 48 << 20))

    cost = pl.CostEstimate(
        flops=7 * rows * size_padded,
        transcendentals=rows,
        bytes_accessed=2 * rows * size_padded * itemsize + 2 * size_padded * 4,
    )

    out2d = pl.pallas_call(
        functools.partial(_norm_kernel, eps=eps, inv_size=1.0 / size,
                          pad_cols=pad_cols),
        out_shape=jax.ShapeDtypeStruct((rows, size_padded), orig_dtype),
        grid_spec=pltpu.PrefetchScalarGridSpec(
            num_scalar_prefetch=0,
            grid=grid,
            in_specs=[
                pl.BlockSpec((tile_rows, size_padded), lambda i: (i, 0)),
                pl.BlockSpec((1, size_padded), lambda i: (0, 0)),
                pl.BlockSpec((1, size_padded), lambda i: (0, 0)),
            ],
            out_specs=pl.BlockSpec((tile_rows, size_padded), lambda i: (i, 0)),
        ),
        compiler_params=pltpu.CompilerParams(
            dimension_semantics=("parallel",),
            vmem_limit_bytes=vmem_limit,
        ),
        cost_estimate=cost,
    )(x2d, w2d, b2d)

    if pad_cols:
        out2d = out2d[:, :size]
    return out2d.reshape(orig_shape)


def _reference_norm(x, weight, bias, eps=1e-5):
    # Matches the PyTorch two-pass formulation exactly.
    orig_dtype = x.dtype
    xf = x.astype(jnp.float32)
    xf = xf - jnp.mean(xf, axis=-1, keepdims=True)
    scale = jnp.sqrt(jnp.mean(xf * xf, axis=-1, keepdims=True) + eps)
    xf = xf / scale
    return (xf * weight.astype(jnp.float32)
            + bias.astype(jnp.float32)).astype(orig_dtype)


if __name__ == "__main__":
    key = jax.random.PRNGKey(0)
    k_x, k_w, k_b = jax.random.split(key, 3)

    batch, seq, hidden = 2, 8, 32

    # Deterministic synthetic parameters (Norm.__init__ has weight/bias of shape (size,)).
    weight = jax.random.normal(k_w, (hidden,), dtype=jnp.float32)
    bias = jax.random.normal(k_b, (hidden,), dtype=jnp.float32)

    # bf16 input exercises the float() upcast + cast back to orig_dtype.
    x = jax.random.normal(k_x, (batch, seq, hidden),
                          dtype=jnp.float32).astype(jnp.bfloat16)

    out = norm_forward(x, weight, bias, eps=1e-5)
    out = jax.block_until_ready(out)

    ref = _reference_norm(x, weight, bias, eps=1e-5)
    assert out.shape == x.shape and out.dtype == x.dtype
    assert jnp.allclose(out.astype(jnp.float32), ref.astype(jnp.float32),
                        atol=1e-2, rtol=1e-2)

    print("KERNEL_OK")
</pallas_src>

<mosaic_0001>
module attributes {stable_mosaic.version = 11 : i64} {
  func.func @_norm_kernel(%arg0: i32, %arg1: memref<16x128xbf16, #tpu.memory_space<vmem>>, %arg2: memref<1x128xf32, #tpu.memory_space<vmem>>, %arg3: memref<1x128xf32, #tpu.memory_space<vmem>>, %arg4: memref<16x128xbf16, #tpu.memory_space<vmem>>) attributes {dimension_semantics = [#tpu.dimension_semantics<parallel>], iteration_bounds = array<i64: 1>, scalar_prefetch = 0 : i64, scratch_operands = 0 : i64, tpu.core_type = #tpu.core_type<tc>, window_params = [{transform_indices = @transform_0, window_bounds = array<i64: 16, 128>}, {pipeline_mode = #tpu.pipeline_mode<synchronous>, transform_indices = @transform_1, window_bounds = array<i64: 1, 128>}, {pipeline_mode = #tpu.pipeline_mode<synchronous>, transform_indices = @transform_2, window_bounds = array<i64: 1, 128>}, {transform_indices = @transform_3, window_bounds = array<i64: 16, 128>}]} {
    %c0 = arith.constant 0 : index
    %c0_0 = arith.constant 0 : index
    %0 = vector.load %arg1[%c0, %c0_0] : memref<16x128xbf16, #tpu.memory_space<vmem>>, vector<16x128xbf16>
    %1 = arith.extf %0 : vector<16x128xbf16> to vector<16x128xf32>
    %cst = arith.constant dense<0.000000e+00> : vector<16xf32>
    %2 = vector.multi_reduction <add>, %1, %cst [1] : vector<16x128xf32> to vector<16xf32>
    %3 = vector.shape_cast %2 : vector<16xf32> to vector<16x1xf32>
    %cst_1 = arith.constant 3.125000e-02 : f32
    %4 = vector.broadcast %cst_1 : f32 to vector<16x1xf32>
    %5 = arith.mulf %3, %4 : vector<16x1xf32>
    %c0_2 = arith.constant 0 : index
    %c0_3 = arith.constant 0 : index
    %6 = vector.load %arg1[%c0_2, %c0_3] : memref<16x128xbf16, #tpu.memory_space<vmem>>, vector<16x128xbf16>
    %7 = arith.extf %6 : vector<16x128xbf16> to vector<16x128xf32>
    %8 = vector.broadcast %5 : vector<16x1xf32> to vector<16x128xf32>
    %9 = arith.subf %7, %8 : vector<16x128xf32>
    %10 = arith.mulf %9, %9 : vector<16x128xf32>
    %cst_4 = arith.constant dense<0.000000e+00> : vector<16xf32>
    %11 = vector.multi_reduction <add>, %10, %cst_4 [1] : vector<16x128xf32> to vector<16xf32>
    %12 = vector.shape_cast %11 : vector<16xf32> to vector<16x1xf32>
    %cst_5 = arith.constant 9.600000e+01 : f32
    %13 = vector.broadcast %cst_5 : f32 to vector<16x1xf32>
    %14 = arith.mulf %13, %5 : vector<16x1xf32>
    %15 = arith.mulf %14, %5 : vector<16x1xf32>
    %16 = arith.subf %12, %15 : vector<16x1xf32>
    %cst_6 = arith.constant 0.000000e+00 : f32
    %17 = vector.broadcast %cst_6 : f32 to vector<16x1xf32>
    %18 = arith.maximumf %16, %17 : vector<16x1xf32>
    %cst_7 = arith.constant 3.125000e-02 : f32
    %19 = vector.broadcast %cst_7 : f32 to vector<16x1xf32>
    %20 = arith.mulf %18, %19 : vector<16x1xf32>
    %cst_8 = arith.constant 9.99999974E-6 : f32
    %21 = vector.broadcast %cst_8 : f32 to vector<16x1xf32>
    %22 = arith.addf %20, %21 : vector<16x1xf32>
    %23 = math.rsqrt %22 : vector<16x1xf32>
    %c0_9 = arith.constant 0 : index
    %c0_10 = arith.constant 0 : index
    %24 = vector.load %arg2[%c0_9, %c0_10] : memref<1x128xf32, #tpu.memory_space<vmem>>, vector<1x128xf32>
    %c0_11 = arith.constant 0 : index
    %c0_12 = arith.constant 0 : index
    %25 = vector.load %arg3[%c0_11, %c0_12] : memref<1x128xf32, #tpu.memory_space<vmem>>, vector<1x128xf32>
    %c0_13 = arith.constant 0 : index
    %c0_14 = arith.constant 0 : index
    %26 = vector.load %arg1[%c0_13, %c0_14] : memref<16x128xbf16, #tpu.memory_space<vmem>>, vector<16x128xbf16>
    %27 = arith.extf %26 : vector<16x128xbf16> to vector<16x128xf32>
    %28 = vector.broadcast %5 : vector<16x1xf32> to vector<16x128xf32>
    %29 = arith.subf %27, %28 : vector<16x128xf32>
    %30 = vector.broadcast %23 : vector<16x1xf32> to vector<16x128xf32>
    %31 = arith.mulf %29, %30 : vector<16x128xf32>
    %32 = vector.broadcast %24 : vector<1x128xf32> to vector<16x128xf32>
    %33 = arith.mulf %31, %32 : vector<16x128xf32>
    %34 = vector.broadcast %25 : vector<1x128xf32> to vector<16x128xf32>
    %35 = arith.addf %33, %34 : vector<16x128xf32>
    %36 = arith.truncf %35 : vector<16x128xf32> to vector<16x128xbf16>
    %c0_15 = arith.constant 0 : index
    %c0_16 = arith.constant 0 : index
    %37 = vector.load %arg4[%c0_15, %c0_16] : memref<16x128xbf16, #tpu.memory_space<vmem>>, vector<16x128xbf16>
    tpu.vector_store %arg4[%c0_15, %c0_16], %36 {strides = array<i32>} : memref<16x128xbf16, #tpu.memory_space<vmem>>, vector<16x128xbf16>,
    return
  }
  func.func @transform_0(%arg0: i32) -> (i32, i32) {
    %c0_i32 = arith.constant 0 : i32
    %c0_i32_0 = arith.constant 0 : i32
    return %arg0, %c0_i32 : i32, i32
  }
  func.func @transform_1(%arg0: i32) -> (i32, i32) {
    %c0_i32 = arith.constant 0 : i32
    %c0_i32_0 = arith.constant 0 : i32
    %c0_i32_1 = arith.constant 0 : i32
    return %c0_i32, %c0_i32_0 : i32, i32
  }
  func.func @transform_2(%arg0: i32) -> (i32, i32) {
    %c0_i32 = arith.constant 0 : i32
    %c0_i32_0 = arith.constant 0 : i32
    %c0_i32_1 = arith.constant 0 : i32
    return %c0_i32, %c0_i32_0 : i32, i32
  }
  func.func @transform_3(%arg0: i32) -> (i32, i32) {
    %c0_i32 = arith.constant 0 : i32
    %c0_i32_0 = arith.constant 0 : i32
    return %arg0, %c0_i32 : i32, i32
  }
}

</mosaic_0001>

<bundles_post_ra>
// kernel: tpu_custom_call.1
= control target key start
LH: loop header
LB: loop body
LE: loop exit
PB: predicated region body
PF: predicated region fallthrough
CT: control target
= control target key end

     0   :  { %8 = vsyncpa [#allocation3], 0  ;;  %s239_s0 = inlined_call_operand.hbm [shape: bf16[16,128], index: 0, kind: input, shape index: {}]   ;;  %s240_s1 = inlined_call_operand.vmem [shape: f32[1,128], index: 1, kind: input, shape index: {}]   ;;  %s241_s2 = inlined_call_operand.vmem [shape: f32[1,128], index: 2, kind: input, shape index: {}]   ;;  %s242_s3 = inlined_call_operand.hbm [shape: bf16[16,128], index: 3, kind: output, shape index: {}]  }
   0x1   :  { %9 = vsyncpa [#allocation4], 0  ;;  %s179_s12 = smov [#allocation2]   ;;  %s131_s16 = scalar_lea.hbm %s239_s0, 128 }
   0x2   :  { %s15_s13 = sshll.u32 %s179_s12, 4  ;;  %p132_p0 = scmp.ne.s32.totalorder %s239_s0, %s131_s16  ;;  %s16_s13 = int_to_ptr.vmem [resolvable:$true] %s15_s13 }
   0x3   :  { %p135_p1 = scmp.lt.u32.totalorder %s131_s16, %s239_s0 }
   0x5   :  { %p137_p2 = pnand %p135_p1, %p132_p0 }
   0x7   :  { %140 = shalt.err (!%p137_p2)
}
   0x8   :  { %s141_s21 = scalar_lea.vmem %s16_s13, 128  ;;  %p146_p4 = scmp.lt.s32.totalorder %s16_s13, %s16_s13 }
   0x9   :  { %p142_p3 = scmp.ne.s32.totalorder %s16_s13, %s141_s21  ;;  %p147_p5 = scmp.lt.s32.totalorder %s141_s21, %s141_s21 }
   0xb   :  { %p148_p6 = por %p147_p5, %p146_p4 }
   0xd   :  { %p149_p7 = pnand %p148_p6, %p142_p3 }
   0xf   :  { %152 = shalt.err (!%p149_p7)
}
  0x10   :  { %s180_s22 = smov 64   ;;  %s181_s23 = smov 4  }
  0x11   :  { %21 = dma.hbm_to_vmem [thread:$0]  %s239_s0, 128, %s16_s13, [#allocation3], %s180_s22, %s180_s22, %s181_s23  }
  0x12   :  { %175 = dma.done.wait [#allocation3], 128  }
  0x13   :  { %176 = vsyncadd [#allocation3], 4294967168  ;;  %v115_v0 = vld [vmem:[#allocation2] sm:$0xff]   ;;  %s182_s29 = smov [#allocation5]  }
  0x14   :  { %v116_v1 = vunpack.c.l.bf16 %v115_v0  ;;  %v117_v2 = vunpack.c.h.bf16 %v115_v0  ;;  %v108_v27 = vld [vmem:[%s240_s1] ss:$0 sm:$0xff]  ;;  %s96_s30 = sshll.u32 %s182_s29, 4  ;;  %s97_s30 = int_to_ptr.vmem [resolvable:$true] %s96_s30 }
  0x15   :  { %v109_v31 = vld [vmem:[%s241_s2] ss:$0 sm:$0xff]  ;;  %s153_s4 = scalar_lea.vmem %s97_s30, 128  ;;  %p158_p9 = scmp.lt.s32.totalorder %s97_s30, %s97_s30 }
  0x16   :  { %33 = vadd.xlane.f32.xlu0 %v116_v1  ;;  %p154_p8 = scmp.ne.s32.totalorder %s97_s30, %s153_s4  ;;  %p159_p10 = scmp.lt.s32.totalorder %s153_s4, %s153_s4 }
  0x18   :  { %p160_p11 = por %p159_p10, %p158_p9 }
  0x1a   :  { %35 = vadd.xlane.f32.xlu0 %v117_v2  ;;  %p161_p12 = pnand %p160_p11, %p154_p8 }
  0xa3   :  { %v34_v3 = vpop.xlane.xlu0 %33 }
  0xa4   :  { %v37_v4 = vmul.f32 0.03125, %v34_v3 }
  0xa6   :  { %v39_v5 = vsub.f32 %v116_v1, %v37_v4  ;;  %v47_v11 = vmul.f32 96.0, %v37_v4 }
  0xa7   :  { %v36_v6 = vpop.xlane.xlu0 %35 }
  0xa8   :  { %v38_v7 = vmul.f32 0.03125, %v36_v6  ;;  %v41_v8 = vmul.f32 %v39_v5, %v39_v5  ;;  %v49_v13 = vmul.f32 %v47_v11, %v37_v4 }
  0xaa   :  { %43 = vadd.xlane.f32.xlu1 %v41_v8  ;;  %v40_v9 = vsub.f32 %v117_v2, %v38_v7  ;;  %v48_v12 = vmul.f32 96.0, %v38_v7 }
  0xac   :  { %v42_v10 = vmul.f32 %v40_v9, %v40_v9  ;;  %v50_v17 = vmul.f32 %v48_v12, %v38_v7 }
  0xae   :  { %45 = vadd.xlane.f32.xlu1 %v42_v10 }
 0x137   :  { %v44_v14 = vpop.xlane.xlu1 %43 }
 0x138   :  { %v51_v15 = vsub.f32 %v44_v14, %v49_v13 }
 0x13a   :  { %v53_v16 = vmax.f32 %v51_v15, 0.0 }
 0x13b   :  { %v46_v18 = vpop.xlane.xlu1 %45 }
 0x13c   :  { %v55_v19 = vmul.f32 0.03125, %v53_v16  ;;  %v52_v20 = vsub.f32 %v46_v18, %v50_v17 }
 0x13e   :  { %v57_v21 = vadd.f32 1e-05, %v55_v19  ;;  %v54_v22 = vmax.f32 %v52_v20, 0.0 }
 0x140   :  { %127 = vrsqrt.f32 %v57_v21  ;;  %v56_v23 = vmul.f32 0.03125, %v54_v22 }
 0x142   :  { %v58_v24 = vadd.f32 1e-05, %v56_v23 }
 0x144   :  { %129 = vrsqrt.f32 %v58_v24 }
 0x14a   :  { %v128_v25 = vpop.eup %127 }
 0x14b   :  { %v63_v26 = vmul.f32 %v128_v25, %v39_v5 }
 0x14d   :  { %v71_v30 = vmul.f32 %v108_v27, %v63_v26 }
 0x14e   :  { %v130_v28 = vpop.eup %129 }
 0x14f   :  { %v64_v29 = vmul.f32 %v130_v28, %v40_v9  ;;  %v79_v33 = vadd.f32 %v109_v31, %v71_v30 }
 0x151   :  { %v72_v32 = vmul.f32 %v108_v27, %v64_v29 }
 0x153   :  { %v80_v34 = vadd.f32 %v109_v31, %v72_v32 }
 0x155   :  { %v121_v35 = vpack.c.bf16 %v80_v34, %v79_v33 }
 0x157   :  { %122 = vst [vmem:[#allocation5] sm:$0xff] %v121_v35  }
 0x158   :  { %164 = shalt.err (!%p161_p12)
}
 0x159   :  { %s165_s6 = scalar_lea.hbm %s242_s3, 128 }
 0x15a   :  { %p166_p13 = scmp.ne.s32.totalorder %s242_s3, %s165_s6  ;;  %p169_p0 = scmp.lt.u32.totalorder %s165_s6, %s242_s3 }
 0x15c   :  { %p171_p1 = pnand %p169_p0, %p166_p13 }
 0x15e   :  { %174 = shalt.err (!%p171_p1)
}
 0x15f   :  { %102 = dma.vmem_to_hbm [thread:$0]  %s97_s30, 128, %s242_s3, [#allocation4], %s180_s22, %s180_s22, %s181_s23  }
 0x160   :  { %177 = dma.done.wait [#allocation4], 128  }
 0x161   :  { %178 = vsyncadd [#allocation4], 4294967168 }
 0x162   :  { %106 = vsyncpa [#allocation3], 1 }
 0x163   :  { %107 = vsyncpa [#allocation4], 1 }

</bundles_post_ra>
